<compile_context>
chip_gen: v7x
topology: tpu7x:2x2x1
jax: 0.10.0
libtpu: 0.0.40
codegen_flags: <defaults>
</compile_context>

<pallas_src>
import jax
import jax.numpy as jnp
from jax import lax
from jax.experimental import pallas as pl
from jax.experimental.pallas import tpu as pltpu

HIDDEN = 768        # matches nn.Linear(768, num_labels) in the reference module
NUM_LABELS = 8
VOCAB = 32          # tiny synthetic vocabulary for the backbone stand-in
ROW_BLOCK = 2048    # tokens per grid step (lane axis), multiple of 128


def _round_up(x, m):
    return (x + m - 1) // m * m


def text_model2_head_kernel(ids_ref, ew_ref, b_ref, out_ref):
    """ids:(1,TM) i32, ew:(C,V) bf16 = (E@W)^T, b:(C,1) f32 -> out:(C,TM) probs.

    Tokens live on the 128-lane axis, labels on the sublane axis, so the store
    is lane-dense and writes only the C useful labels.
    """
    v = ew_ref.shape[1]
    tm = ids_ref.shape[1]

    # Backbone stand-in + folded shared classifier: logits^T = (E@W)^T @ onehot^T.
    ids = ids_ref[...]                                      # (1, TM) int32
    iota = lax.broadcasted_iota(jnp.int32, (v, tm), 0)      # (V, TM)
    onehot_t = (iota == ids).astype(jnp.bfloat16)           # (V, TM) bf16 (exact 0/1)
    logits = jnp.dot(ew_ref[...], onehot_t,
                     preferred_element_type=jnp.float32)    # (C, TM) f32 accumulate
    logits = logits + b_ref[...]                            # (C, 1) bias broadcast

    # Numerically-stable softmax over the label (sublane) axis, all in f32.
    m = jnp.max(logits, axis=0, keepdims=True)              # (1, TM)
    e = jnp.exp(logits - m)
    denom = jnp.sum(e, axis=0, keepdims=True)
    out_ref[...] = (e / denom).astype(out_ref.dtype)        # exact normalization


def text_model2_forward(input_ids, attention_mask, embedding_table, weight, bias,
                        *, row_block=ROW_BLOCK):
    """input_ids:[B,L] i32, embedding_table:[V,H], weight:[H,C] (W^T), bias:[C].

    Returns softmax'd logits [B, L, C] (inference path of TextModel2.forward).
    """
    del attention_mask  # TODO(synk): consumed only by the real (untranslatable) backbone
    B, L = input_ids.shape
    V, H = embedding_table.shape
    C = weight.shape[1]

    # One-time weight preprocessing (input-independent): fold embedding lookup
    # and the shared classifier into a tiny (C, V) logits table, cast to bf16
    # for the MXU.  Bias stays f32 and is added inside the kernel.
    ew = jnp.dot(embedding_table.astype(jnp.float32), weight.astype(jnp.float32))  # (V, C)
    ew_t = ew.T.astype(jnp.bfloat16)                        # (C, V)
    b_col = bias.astype(jnp.float32).reshape(C, 1)          # (C, 1)

    # Row tiling: tokens are the lane axis, so pad rows to a multiple of 128.
    n_rows = B * L
    rows128 = _round_up(max(n_rows, 1), 128)
    tm = min(row_block, rows128)
    # Keep at least 2 grid steps on nontrivial inputs so both v7x TensorCores
    # get work from the "parallel" axis.
    if rows128 >= 256 and rows128 // tm < 2:
        tm = _round_up((rows128 + 1) // 2, 128)
    padded_rows = _round_up(rows128, tm)
    grid = padded_rows // tm

    ids = input_ids.reshape(-1).astype(jnp.int32)
    ids = jnp.pad(ids, (0, padded_rows - n_rows)).reshape(1, padded_rows)

    probs_t = pl.pallas_call(
        text_model2_head_kernel,
        out_shape=jax.ShapeDtypeStruct((C, padded_rows), jnp.float32),
        grid_spec=pltpu.PrefetchScalarGridSpec(
            num_scalar_prefetch=0,
            grid=(grid,),
            in_specs=[
                pl.BlockSpec((1, tm), lambda i: (0, i)),    # token ids (lane axis)
                pl.BlockSpec((C, V), lambda i: (0, 0)),     # folded (E@W)^T, resident
                pl.BlockSpec((C, 1), lambda i: (0, 0)),     # bias column, resident
            ],
            out_specs=pl.BlockSpec((C, tm), lambda i: (0, i)),
        ),
        compiler_params=pltpu.CompilerParams(
            dimension_semantics=("parallel",)),
    )(ids, ew_t, b_col)

    # Un-transpose, drop row padding, restore (B, L, C).
    return probs_t.T[:n_rows, :].reshape(B, L, C)


def _reference_forward(input_ids, embedding_table, weight, bias):
    x = embedding_table[input_ids]                          # (B, L, H)
    logits = jnp.einsum("blh,hc->blc", x, weight) + bias    # (B, L, C)
    return jax.nn.softmax(logits, axis=-1)


if __name__ == "__main__":
    B, L = 2, 8

    key = jax.random.PRNGKey(0)
    k_ids, k_emb, k_w, k_b = jax.random.split(key, 4)

    input_ids = jax.random.randint(k_ids, (B, L), 0, VOCAB, dtype=jnp.int32)
    attention_mask = jnp.ones((B, L), dtype=jnp.int32)

    # Deterministic synthetic parameters.
    embedding_table = 0.02 * jax.random.normal(k_emb, (VOCAB, HIDDEN), dtype=jnp.float32)
    weight = 0.02 * jax.random.normal(k_w, (HIDDEN, NUM_LABELS), dtype=jnp.float32)  # W^T
    bias = 0.01 * jax.random.normal(k_b, (NUM_LABELS,), dtype=jnp.float32)

    probs = text_model2_forward(input_ids, attention_mask, embedding_table, weight, bias)
    probs = jax.block_until_ready(probs)

    # Sanity: shape, rows sum to 1, and match against a pure-JAX reference
    # (tolerance covers the bf16 folded-table operands).
    assert probs.shape == (B, L, NUM_LABELS)
    assert bool(jnp.allclose(jnp.sum(probs, axis=-1), 1.0, atol=1e-3))
    ref = _reference_forward(input_ids, embedding_table, weight, bias)
    assert bool(jnp.allclose(probs, ref, atol=1e-2, rtol=1e-2))
    print("KERNEL_OK")
</pallas_src>

<mosaic_0001>
module attributes {stable_mosaic.version = 11 : i64} {
  func.func @text_model2_head_kernel(%arg0: i32, %arg1: memref<1x128xi32, #tpu.memory_space<vmem>>, %arg2: memref<8x32xbf16, #tpu.memory_space<vmem>>, %arg3: memref<8x1xf32, #tpu.memory_space<vmem>>, %arg4: memref<8x128xf32, #tpu.memory_space<vmem>>) attributes {dimension_semantics = [#tpu.dimension_semantics<parallel>], iteration_bounds = array<i64: 1>, scalar_prefetch = 0 : i64, scratch_operands = 0 : i64, tpu.core_type = #tpu.core_type<tc>, window_params = [{transform_indices = @transform_0, window_bounds = array<i64: 1, 128>}, {pipeline_mode = #tpu.pipeline_mode<synchronous>, transform_indices = @transform_1, window_bounds = array<i64: 8, 32>}, {pipeline_mode = #tpu.pipeline_mode<synchronous>, transform_indices = @transform_2, window_bounds = array<i64: 8, 1>}, {transform_indices = @transform_3, window_bounds = array<i64: 8, 128>}]} {
    %c0 = arith.constant 0 : index
    %c0_0 = arith.constant 0 : index
    %0 = vector.load %arg1[%c0, %c0_0] : memref<1x128xi32, #tpu.memory_space<vmem>>, vector<1x128xi32>
    %1 = tpu.iota {dimensions = array<i32: 0>} : vector<32x128xi32>
    %2 = vector.broadcast %0 : vector<1x128xi32> to vector<32x128xi32>
    %3 = arith.cmpi eq, %1, %2 : vector<32x128xi32>
    %4 = arith.extui %3 : vector<32x128xi1> to vector<32x128xi32>
    %5 = arith.sitofp %4 : vector<32x128xi32> to vector<32x128xf32>
    %6 = arith.truncf %5 : vector<32x128xf32> to vector<32x128xbf16>
    %c0_1 = arith.constant 0 : index
    %c0_2 = arith.constant 0 : index
    %7 = vector.load %arg2[%c0_1, %c0_2] : memref<8x32xbf16, #tpu.memory_space<vmem>>, vector<8x32xbf16>
    %cst = arith.constant dense<0.000000e+00> : vector<8x128xf32>
    %8 = tpu.matmul %7, %6, %cst {dimension_numbers = #tpu.dot_dimension_numbers<[1], [0], [0], [1], [0, 0, 1, 1], [], []>} : vector<8x32xbf16>, vector<32x128xbf16>, vector<8x128xf32> -> vector<8x128xf32>
    %c0_3 = arith.constant 0 : index
    %c0_4 = arith.constant 0 : index
    %9 = vector.load %arg3[%c0_3, %c0_4] : memref<8x1xf32, #tpu.memory_space<vmem>>, vector<8x1xf32>
    %10 = vector.broadcast %9 : vector<8x1xf32> to vector<8x128xf32>
    %11 = arith.addf %8, %10 : vector<8x128xf32>
    %cst_5 = arith.constant dense<0xFF800000> : vector<128xf32>
    %12 = vector.multi_reduction <maximumf>, %11, %cst_5 [0] : vector<8x128xf32> to vector<128xf32>
    %13 = vector.shape_cast %12 : vector<128xf32> to vector<1x128xf32>
    %14 = vector.broadcast %13 : vector<1x128xf32> to vector<8x128xf32>
    %15 = arith.subf %11, %14 : vector<8x128xf32>
    %16 = math.exp %15 : vector<8x128xf32>
    %cst_6 = arith.constant dense<0.000000e+00> : vector<128xf32>
    %17 = vector.multi_reduction <add>, %16, %cst_6 [0] : vector<8x128xf32> to vector<128xf32>
    %18 = vector.shape_cast %17 : vector<128xf32> to vector<1x128xf32>
    %19 = vector.broadcast %18 : vector<1x128xf32> to vector<8x128xf32>
    %20 = arith.divf %16, %19 : vector<8x128xf32>
    %c0_7 = arith.constant 0 : index
    %c0_8 = arith.constant 0 : index
    %21 = vector.load %arg4[%c0_7, %c0_8] : memref<8x128xf32, #tpu.memory_space<vmem>>, vector<8x128xf32>
    tpu.vector_store %arg4[%c0_7, %c0_8], %20 {strides = array<i32>} : memref<8x128xf32, #tpu.memory_space<vmem>>, vector<8x128xf32>,
    return
  }
  func.func @transform_0(%arg0: i32) -> (i32, i32) {
    %c0_i32 = arith.constant 0 : i32
    %c0_i32_0 = arith.constant 0 : i32
    return %c0_i32, %arg0 : i32, i32
  }
  func.func @transform_1(%arg0: i32) -> (i32, i32) {
    %c0_i32 = arith.constant 0 : i32
    %c0_i32_0 = arith.constant 0 : i32
    %c0_i32_1 = arith.constant 0 : i32
    return %c0_i32, %c0_i32_0 : i32, i32
  }
  func.func @transform_2(%arg0: i32) -> (i32, i32) {
    %c0_i32 = arith.constant 0 : i32
    %c0_i32_0 = arith.constant 0 : i32
    %c0_i32_1 = arith.constant 0 : i32
    return %c0_i32, %c0_i32_0 : i32, i32
  }
  func.func @transform_3(%arg0: i32) -> (i32, i32) {
    %c0_i32 = arith.constant 0 : i32
    %c0_i32_0 = arith.constant 0 : i32
    return %c0_i32, %arg0 : i32, i32
  }
}

</mosaic_0001>

<bundles_post_ra>
// kernel: tpu_custom_call.1
= control target key start
LH: loop header
LB: loop body
LE: loop exit
PB: predicated region body
PF: predicated region fallthrough
CT: control target
= control target key end

     0   :  { %v17_v0 = vlaneseq  ;;  %v178_v1 = vmov 0.0   ;;  %vm179_vm0 = vmmov 0   ;;  %v180_v5 = vmov 0   ;;  %s224_s0 = inlined_call_operand.vmem [shape: s32[1,128], index: 0, kind: input, shape index: {}]   ;;  %s225_s1 = inlined_call_operand.vmem [shape: bf16[8,32], index: 1, kind: input, shape index: {}]   ;;  %s226_s2 = inlined_call_operand.vmem [shape: f32[8,1], index: 2, kind: input, shape index: {}]   ;;  %s227_s3 = inlined_call_operand.hbm [shape: f32[8,128], index: 3, kind: output, shape index: {}]  }
   0x1   :  { %136 = vmatprep.subr.bf16.mxu0 %v178_v1  ;;  %v123_v2 = vld [vmem:[%s224_s0] ss:$0 sm:$0xff]  ;;  %140 = vmatprep.mubr.msk.bf16.mxu0 %vm179_vm0, %v178_v1 }
   0x2   :  { %v41_v3 = vld [vmem:[%s226_s2] sm:$0xff]  ;;  %v18_v4 = vshrl.u32 %v17_v0, 7  ;;  %149 = vset.pattern.permute.xlu0 %v180_v5 }
   0x3   :  { %8 = vsyncpa [#allocation3], 0  ;;  %44 = vperm.xlu0 %149, %v41_v3   ;;  %v181_v9 = vmov 1.0|1.0   ;;  %v40_v10 = vld [vmem:[%s225_s1] sm:$0xf] }
   0x4   :  { %v19_v6 = vadd.s32 8, %v18_v4  ;;  %vm26_vm1 = vcmp.eq.s32.totalorder %v18_v4, %v123_v2  ;;  %v20_v7 = vadd.s32 16, %v18_v4  ;;  %v21_v8 = vadd.s32 24, %v18_v4  ;;  %s182_s1 = smov [#allocation2]  }
   0x5   :  { %vm47_vm7 = vcmask 261120   ;;  %s115_s16 = sshll.u32 %s182_s1, 4  ;;  %s116_s16 = int_to_ptr.vmem [resolvable:$true] %s115_s16 }
   0x6   :  { %vm27_vm2 = vcmp.eq.s32.totalorder %v19_v6, %v123_v2  ;;  %vm28_vm3 = vcmp.eq.s32.totalorder %v20_v7, %v123_v2  ;;  %vm29_vm4 = vcmp.eq.s32.totalorder %v21_v8, %v123_v2  ;;  %s154_s17 = scalar_lea.vmem %s116_s16, 128  ;;  %p159_p1 = scmp.lt.s32.totalorder %s116_s16, %s116_s16 }
   0x7   :  { %vm128_vm5 = vmpackc.low %vm27_vm2, %vm26_vm1  ;;  %p155_p0 = scmp.ne.s32.totalorder %s116_s16, %s154_s17  ;;  %p160_p2 = scmp.lt.s32.totalorder %s154_s17, %s154_s17 }
   0x8   :  { %137 = vmatpush3.bf16.msk.msra.mxu0 %vm128_vm5, %v181_v9  ;;  %vm130_vm6 = vmpackc.low %vm29_vm4, %vm28_vm3 }
   0x9   :  { %138 = vmatprep.subr.bf16.mxu0 %v178_v1  ;;  %p161_p3 = por %p160_p2, %p159_p1 }
   0xb   :  { %p162_p4 = pnand %p161_p3, %p155_p0 }
   0xc   :  { %139 = vmatpush3.bf16.msk.msra.mxu0 %vm130_vm6, %v181_v9 }
   0xf   :  { %141 = vmatmul.mubr.msk.bf16.vlgmr.msra.gmra.mrb[0].mxu0 %vm47_vm7, %v40_v10 }
  0x82   :  { %v45_v11 = vpop.permute.xlu0 %44 }
  0xe2   :  { %v85_v12 = vpop.f32.mrb[0].mxu0 }
  0xe3   :  { %v86_v13 = vadd.f32 %v85_v12, %v45_v11  ;;  %v142_v14 = vpop.f32.mrb[1].mxu0 }
  0xe4   :  { %v88_v15 = vpop.f32.mrb[2].mxu0 }
  0xe5   :  { %v91_v16 = vrot.slane %v86_v13, 4  ;;  %v143_v17 = vpop.f32.mrb[3].mxu0 }
  0xe7   :  { %v92_v18 = vmax.f32 %v86_v13, %v91_v16 }
  0xe9   :  { %v93_v19 = vrot.slane %v92_v18, 2 }
  0xeb   :  { %v94_v20 = vmax.f32 %v92_v18, %v93_v19 }
  0xed   :  { %v95_v21 = vrot.slane %v94_v20, 1 }
  0xef   :  { %v96_v22 = vmax.f32 %v94_v20, %v95_v21 }
  0xf1   :  { %v97_v23 = vsub.f32 %v86_v13, %v96_v22 }
  0xf3   :  { %v98_v24 = vmul.f32 1.442695, %v97_v23 }
  0xf5   :  { %150 = vpow2.f32 %v98_v24 }
  0xff   :  { %v151_v25 = vpop.eup %150 }
 0x100   :  { %v100_v26 = vrot.slane %v151_v25, 4 }
 0x102   :  { %v101_v27 = vadd.f32 %v151_v25, %v100_v26 }
 0x104   :  { %v102_v28 = vrot.slane %v101_v27, 2 }
 0x106   :  { %v103_v29 = vadd.f32 %v102_v28, %v101_v27 }
 0x108   :  { %v104_v30 = vrot.slane %v103_v29, 1 }
 0x10a   :  { %v105_v31 = vadd.f32 %v104_v30, %v103_v29 }
 0x10c   :  { %152 = vrcp.f32 %v105_v31 }
 0x116   :  { %v153_v32 = vpop.eup %152 }
 0x117   :  { %v107_v33 = vmul.f32 %v153_v32, %v151_v25 }
 0x119   :  { %108 = vst [vmem:[#allocation2] sm:$0xff] %v107_v33 }
 0x11a   :  { %165 = shalt.err (!%p162_p4)
}
 0x11b   :  { %s166_s20 = scalar_lea.hbm %s227_s3, 128 }
 0x11c   :  { %p167_p5 = scmp.ne.s32.totalorder %s227_s3, %s166_s20  ;;  %p170_p6 = scmp.lt.u32.totalorder %s166_s20, %s227_s3 }
 0x11e   :  { %p172_p7 = pnand %p170_p6, %p167_p5 }
 0x120   :  { %175 = shalt.err (!%p172_p7)
}
 0x121   :  { %118 = dma.vmem_to_hbm [thread:$0]  %s116_s16, 128, %s227_s3, [#allocation3]  }
 0x122   :  { %176 = dma.done.wait [#allocation3], 128  }
 0x123   :  { %177 = vsyncadd [#allocation3], 4294967168 }
 0x124   :  { %122 = vsyncpa [#allocation3], 1 }

</bundles_post_ra>
